<compile_context>
chip_gen: v7x
topology: tpu7x:2x2x1
jax: 0.10.0
libtpu: 0.0.40
codegen_flags: <defaults>
</compile_context>

<pallas_src>
import functools

import jax
import jax.numpy as jnp
from jax.experimental import pallas as pl
from jax.experimental.pallas import tpu as pltpu


# ----------------------------------------------------------------------------
# small helpers
# ----------------------------------------------------------------------------
def _pair(v):
    return (v, v) if isinstance(v, int) else tuple(v)


def _quadruple(v):
    return (v, v, v, v) if isinstance(v, int) else tuple(v)


def _round_up(x, m):
    return -(-x // m) * m


_LANE = 128
_TARGET_BLOCK_BYTES = 2 * 1024 * 1024     # per-step IO block target (sweepable)


@functools.lru_cache(maxsize=None)
def _tpu_vmem_capacity_bytes():
    """Physical VMEM per TensorCore (generation aware, safe fallback)."""
    try:
        return int(pltpu.get_tpu_info().vmem_capacity_bytes)
    except Exception:                      # off-TPU / older API: assume v7x (64 MiB)
        return 64 * 1024 * 1024


def _vmem_limit_bytes(block_bytes, block_elems):
    """Scoped-VMEM limit derived from the actual working set.

    ~2x double-buffered input + output blocks, plus ~8 live f32-width
    block-sized temporaries inside the median network (conservative for bf16
    on v5e, which widens to f32), plus slack.
    """
    need = 4 * block_bytes + 8 * block_elems * 4 + (2 << 20)
    cap = (_tpu_vmem_capacity_bytes() * 9) // 10
    return int(min(max(need, 16 << 20), cap))


def _choose_groups_per_step(total, cap):
    """Pick how many work groups to pack into one grid step.

    Preference order: (a) at least min(4, total) grid steps so v7x's two
    TensorCores each get >= 2 steps, (b) an even step count (balanced 2-TC
    split), (c) minimal padding waste, (d) fewest steps (biggest blocks).
    """
    cap = max(1, min(cap, total))

    def score(c):
        steps = -(-total // c)
        waste = steps * c - total
        too_few = max(0, min(4, total) - steps)
        odd = 1 if (steps > 1 and steps % 2 == 1) else 0
        return (too_few, odd, waste, steps)

    return min(range(1, cap + 1), key=score)


# ----------------------------------------------------------------------------
# selection network for non-3x3 windows (odd-even sort + dead-side pruning)
# ----------------------------------------------------------------------------
def _pruned_selection_network(n):
    """Returns (ops, out_wire); ops = [(i, j, need_min, need_max)].

    Wire i receives min(i, j) iff need_min, wire j receives max(i, j) iff
    need_max; out_wire ends up holding the lower median (torch.median).
    """
    pairs = []
    for rnd in range(n):
        for i in range(rnd % 2, n - 1, 2):
            pairs.append((i, i + 1))
    out_wire = (n - 1) // 2
    needed = {out_wire}
    kept = []
    for i, j in reversed(pairs):
        need_min, need_max = i in needed, j in needed
        if not (need_min or need_max):
            continue
        kept.append((i, j, need_min, need_max))
        needed.add(i)
        needed.add(j)
    kept.reverse()
    return kept, out_wire


# ----------------------------------------------------------------------------
# roll-direction probe (one tiny cached pallas_call): the tap-gather direction
# and the wrap-discard analysis both depend on the rotate convention.
# ----------------------------------------------------------------------------
@functools.lru_cache(maxsize=None)
def _roll_is_numpy_like():
    def k(x_ref, o_ref):
        o_ref[...] = pltpu.roll(x_ref[...], 1, axis=1)

    x = jax.lax.broadcasted_iota(jnp.int32, (8, 128), 1)
    out = pl.pallas_call(
        k, out_shape=jax.ShapeDtypeStruct((8, 128), jnp.int32))(x)
    # np.roll semantics: the element at the last index moves to index 0.
    return int(out[0, 0]) == 127


def _shift(v, d, axis, np_roll):
    """result[..., i, ...] = v[..., i + d, ...] along `axis` (with wraparound)."""
    if d == 0:
        return v
    size = v.shape[axis]
    d = d % size
    if d == 0:
        return v
    shift = (size - d) if np_roll else d
    return pltpu.roll(v, shift, axis=axis)


# ----------------------------------------------------------------------------
# kernels
# ----------------------------------------------------------------------------
def _median3x3_kernel(x_ref, o_ref, *, v_axis, v_step, np_roll):
    """Exact 3x3 lower median, separable form (18 min/max, 8 rolls).

    Peak live block-sized temporaries ~6 (vs ~10 for a flat 9-tap network),
    keeping vld/vst slot pressure and the VMEM working set low.
    """
    # NOTE: a further win would be an in-kernel fori_loop over ~512-lane
    # strips kept entirely in vregs, storing only the final median per strip.
    x = x_ref[...]
    sh = lambda v, d, ax: _shift(v, d, ax, np_roll)

    # vertical stage: sort the 3 row taps per position -> lo <= mid <= hi
    r1 = sh(x, v_step, v_axis)
    r2 = sh(x, 2 * v_step, v_axis)
    lo01 = jnp.minimum(x, r1)
    hi01 = jnp.maximum(x, r1)
    hi = jnp.maximum(hi01, r2)
    m01 = jnp.minimum(hi01, r2)
    lo = jnp.minimum(lo01, m01)
    mid = jnp.maximum(lo01, m01)

    # horizontal stage: combine the 3 column taps of lo / mid / hi
    lo_max = jnp.maximum(jnp.maximum(lo, sh(lo, 1, 1)), sh(lo, 2, 1))
    hi_min = jnp.minimum(jnp.minimum(hi, sh(hi, 1, 1)), sh(hi, 2, 1))
    m1 = sh(mid, 1, 1)
    m2 = sh(mid, 2, 1)
    mid_med = jnp.maximum(jnp.minimum(mid, m1),
                          jnp.minimum(jnp.maximum(mid, m1), m2))

    o_ref[...] = jnp.maximum(jnp.minimum(lo_max, mid_med),
                             jnp.minimum(jnp.maximum(lo_max, mid_med), hi_min))


def _median_generic_kernel(x_ref, o_ref, *, kh, kw, v_axis, v_step,
                           ops, out_wire, np_roll):
    """Fallback for non-3x3 windows: gather taps + pruned selection network."""
    x = x_ref[...]
    sh = lambda v, d, ax: _shift(v, d, ax, np_roll)
    taps = []
    for di in range(kh):
        if v_axis == 1:
            taps.extend(sh(x, di * v_step + dj, 1) for dj in range(kw))
        else:
            row_v = sh(x, di * v_step, 0)
            taps.extend(sh(row_v, dj, 1) for dj in range(kw))
    for i, j, need_min, need_max in ops:
        a, b = taps[i], taps[j]
        if need_min:
            taps[i] = jnp.minimum(a, b)
        if need_max:
            taps[j] = jnp.maximum(a, b)
    o_ref[...] = taps[out_wire]


def _run_median_2d(x2, kh, kw, block_rows, v_axis, v_step):
    """Dense (stride-1) median over a 2-D layout, tiled along axis 0."""
    rows, cols = x2.shape
    assert rows % block_rows == 0
    itemsize = jnp.dtype(x2.dtype).itemsize
    block_elems = block_rows * cols
    vmem_limit = _vmem_limit_bytes(block_elems * itemsize, block_elems)

    if kh == 3 and kw == 3:
        kernel = functools.partial(_median3x3_kernel, v_axis=v_axis,
                                   v_step=v_step, np_roll=_roll_is_numpy_like())
    else:
        ops, out_wire = _pruned_selection_network(kh * kw)
        kernel = functools.partial(_median_generic_kernel, kh=kh, kw=kw,
                                   v_axis=v_axis, v_step=v_step, ops=ops,
                                   out_wire=out_wire,
                                   np_roll=_roll_is_numpy_like())

    spec = pl.BlockSpec((block_rows, cols), lambda i: (i, 0))
    return pl.pallas_call(
        kernel,
        out_shape=jax.ShapeDtypeStruct((rows, cols), x2.dtype),
        grid=(rows // block_rows,),
        in_specs=[spec],
        out_specs=spec,
        compiler_params=pltpu.CompilerParams(
            dimension_semantics=("parallel",),
            vmem_limit_bytes=vmem_limit),
    )(x2)


# ----------------------------------------------------------------------------
# layout dispatch
# ----------------------------------------------------------------------------
def _median_filter_dense(x, kh, kw, *, target_block_bytes=None,
                         _allow_row_split=True):
    """x: (P, Hp, Wp) -> stride-1 dense lower-median map (P, Hp-kh+1, Wp-kw+1)."""
    if kh == 1 and kw == 1:
        return x
    target = _TARGET_BLOCK_BYTES if target_block_bytes is None else target_block_bytes
    p, hp, wp = x.shape
    h_dense, w_dense = hp - kh + 1, wp - kw + 1
    itemsize = jnp.dtype(x.dtype).itemsize

    # ---- packed layout: one plane flattened row-major per sublane row -------
    l = hp * wp
    l_pad = _round_up(l, _LANE)
    group_bytes = 8 * l_pad * itemsize                 # 8 planes (sublane tile)
    if group_bytes <= target:
        # Wrap/pad-safety invariant: a kept output (h <= hp-kh, w <= wp-kw)
        # only reads flat lanes h*wp + w + di*wp + dj <= l-1 < l_pad, so lane
        # rolls never feed wrapped or padded lanes into kept outputs, and
        # planes never mix (each plane occupies exactly one sublane row).
        assert (h_dense - 1) * wp + (w_dense - 1) + (kh - 1) * wp + (kw - 1) == l - 1 < l_pad
        groups = -(-p // 8)
        per_step = _choose_groups_per_step(groups, max(1, target // group_bytes))
        block_rows = 8 * per_step
        steps = -(-groups // per_step)
        p_pad = steps * block_rows
        x2 = x.reshape(p, l)
        if p_pad != p or l_pad != l:
            x2 = jnp.pad(x2, ((0, p_pad - p), (0, l_pad - l)))
        out2 = _run_median_2d(x2, kh, kw, block_rows, v_axis=1, v_step=wp)
        if l_pad != l:
            out2 = out2[:, :l]
        return out2[:p].reshape(p, hp, wp)[:, :h_dense, :w_dense]

    # ---- wide layout: W along lanes, planes stacked along the sublane axis --
    # TODO(synk): when Mosaic rotate supports non-128-aligned lane extents,
    # full-extent unpadded W blocks would avoid this pad pass entirely.
    row_align = max(8, 32 // itemsize)
    hp_eff = _round_up(hp, row_align)
    w_cols = _round_up(wp, _LANE)                      # lane-dense, unmasked stores
    plane_bytes = hp_eff * w_cols * itemsize
    if plane_bytes <= target or not _allow_row_split:
        # Invariant: kept outputs only read rows h+di <= hp-1 < hp_eff and
        # cols w+dj <= wp-1 < w_cols of their own plane; roll wrap / padding
        # only reaches discarded rows / cols.
        assert hp - 1 < hp_eff and wp - 1 < w_cols
        per_step = _choose_groups_per_step(p, max(1, target // plane_bytes))
        steps = -(-p // per_step)
        p_pad = steps * per_step
        if p_pad != p or hp_eff != hp or w_cols != wp:
            x = jnp.pad(x, ((0, p_pad - p), (0, hp_eff - hp), (0, w_cols - wp)))
        x2 = x.reshape(p_pad * hp_eff, w_cols)
        out2 = _run_median_2d(x2, kh, kw, per_step * hp_eff, v_axis=0, v_step=1)
        return out2.reshape(p_pad, hp_eff, w_cols)[:p, :h_dense, :w_dense]

    # ---- planes too large for one block: row-tile with a (kh-1)-row halo ----
    return _row_split_dense(x, kh, kw, target, itemsize)


def _row_split_dense(x, kh, kw, target, itemsize):
    """Split tall planes into overlapping row tiles (halo = kh-1) and recurse."""
    p, hp, wp = x.shape
    h_dense, w_dense = hp - kh + 1, wp - kw + 1
    row_align = max(8, 32 // itemsize)
    w_est = _round_up(wp, _LANE)
    rows_budget = max(1, target // (w_est * itemsize))
    tile_h = max(kh, (rows_budget // row_align) * row_align)
    # TODO(synk): extremely wide planes (even kh rows over budget) would also
    # need W tiling with a (kw-1)-lane halo; not required for these shapes.
    td = tile_h - kh + 1                               # dense rows per tile
    nt = -(-h_dense // td)
    hp_need = (nt - 1) * td + tile_h
    if hp_need > hp:
        x = jnp.pad(x, ((0, 0), (0, hp_need - hp), (0, 0)))
    idx = (jnp.arange(nt) * td)[:, None] + jnp.arange(tile_h)[None, :]
    tiles = x[:, idx, :].reshape(p * nt, tile_h, wp)
    dense_t = _median_filter_dense(tiles, kh, kw, target_block_bytes=target,
                                   _allow_row_split=False)
    return dense_t.reshape(p, nt * td, w_dense)[:, :h_dense, :]


# ----------------------------------------------------------------------------
# module wrapper (PyTorch MedianPool2d semantics)
# ----------------------------------------------------------------------------
class MedianPool2dPallas:
    """Pallas/TPU equivalent of the PyTorch MedianPool2d forward pass."""

    def __init__(self, kernel_size=3, stride=1, padding=0, same=False):
        self.k = _pair(kernel_size)
        self.stride = _pair(stride)
        self.padding = _quadruple(padding)       # (left, right, top, bottom)
        self.same = same

    def _pad_amount(self, x):
        if self.same:
            ih, iw = x.shape[2], x.shape[3]
            if ih % self.stride[0] == 0:
                ph = max(self.k[0] - self.stride[0], 0)
            else:
                ph = max(self.k[0] - ih % self.stride[0], 0)
            if iw % self.stride[1] == 0:
                pw = max(self.k[1] - self.stride[1], 0)
            else:
                pw = max(self.k[1] - iw % self.stride[1], 0)
            p_l = pw // 2
            p_r = pw - p_l
            p_t = ph // 2
            p_b = ph - p_t
            return (p_l, p_r, p_t, p_b)
        return self.padding

    def __call__(self, x):
        n, c, h, w = x.shape
        kh, kw = self.k
        sh, sw = self.stride

        p_l, p_r, p_t, p_b = self._pad_amount(x)
        if p_l or p_r or p_t or p_b:
            # Reflect padding is plain-JAX glue, matching F.pad(mode='reflect').
            x = jnp.pad(x, ((0, 0), (0, 0), (p_t, p_b), (p_l, p_r)),
                        mode="reflect")

        hp, wp = x.shape[2], x.shape[3]
        h_out = (hp - kh) // sh + 1
        w_out = (wp - kw) // sw + 1

        dense = _median_filter_dense(x.reshape(n * c, hp, wp), kh, kw)
        # TODO(synk): stride > 1 currently subsamples the dense (stride-1)
        # median map wrapper-side; in-kernel row subsampling before the store
        # would cut writeback by ~stride_h.
        out = dense[:, ::sh, ::sw][:, :h_out, :w_out]
        return out.reshape(n, c, h_out, w_out)


# ----------------------------------------------------------------------------
# pure-JAX reference (PyTorch forward semantics: lower median, reflect pad)
# ----------------------------------------------------------------------------
def _reference_median_pool(x, kernel_size=3, stride=1, padding=0, same=False):
    k = _pair(kernel_size)
    s = _pair(stride)
    pad = _quadruple(padding)
    n, c, h, w = x.shape
    if same:
        ph = max(k[0] - s[0], 0) if h % s[0] == 0 else max(k[0] - h % s[0], 0)
        pw = max(k[1] - s[1], 0) if w % s[1] == 0 else max(k[1] - w % s[1], 0)
        pad = (pw // 2, pw - pw // 2, ph // 2, ph - ph // 2)
    p_l, p_r, p_t, p_b = pad
    xp = jnp.pad(x, ((0, 0), (0, 0), (p_t, p_b), (p_l, p_r)), mode="reflect")
    hp, wp = xp.shape[2], xp.shape[3]
    h_out = (hp - k[0]) // s[0] + 1
    w_out = (wp - k[1]) // s[1] + 1
    windows = []
    for di in range(k[0]):
        for dj in range(k[1]):
            windows.append(xp[:, :,
                              di:di + (h_out - 1) * s[0] + 1:s[0],
                              dj:dj + (w_out - 1) * s[1] + 1:s[1]])
    stacked = jnp.stack(windows, axis=-1)
    srt = jnp.sort(stacked, axis=-1)
    nwin = k[0] * k[1]
    return srt[..., (nwin - 1) // 2]             # torch.median -> lower median


if __name__ == "__main__":
    key = jax.random.PRNGKey(0)
    x = jax.random.normal(key, (2, 4, 16, 16), dtype=jnp.float32)

    configs = [
        dict(kernel_size=3, stride=1, padding=0, same=False),   # module defaults
        dict(kernel_size=3, stride=1, padding=0, same=True),    # 'same' reflect pad
        dict(kernel_size=3, stride=2, padding=1, same=False),   # strided pooling
        dict(kernel_size=2, stride=1, padding=0, same=False),   # non-3x3 fallback
    ]
    expected_shapes = [(2, 4, 14, 14), (2, 4, 16, 16), (2, 4, 8, 8), (2, 4, 15, 15)]

    for cfg, exp_shape in zip(configs, expected_shapes):
        pool = MedianPool2dPallas(**cfg)
        out = jax.block_until_ready(pool(x))
        ref = _reference_median_pool(x, **cfg)
        assert out.shape == exp_shape, (cfg, out.shape)
        assert jnp.allclose(out, ref, atol=1e-6, rtol=1e-6), f"mismatch for {cfg}"

    # Extra coverage: force the wide layout and the row-split (halo) path with
    # small block budgets, validating against the same reference.
    xw = jax.random.normal(jax.random.PRNGKey(1), (3, 20, 160), dtype=jnp.float32)
    ref_w = _reference_median_pool(xw[None], kernel_size=3, stride=1,
                                   padding=0, same=False)[0]
    out_wide = jax.block_until_ready(
        _median_filter_dense(xw, 3, 3, target_block_bytes=48 * 1024))
    assert jnp.allclose(out_wide, ref_w, atol=1e-6, rtol=1e-6)
    out_split = jax.block_until_ready(
        _median_filter_dense(xw, 3, 3, target_block_bytes=8 * 1024))
    assert jnp.allclose(out_split, ref_w, atol=1e-6, rtol=1e-6)

    print("KERNEL_OK")
</pallas_src>

<mosaic_0001>
module attributes {stable_mosaic.version = 11 : i64} {
  func.func @k(%arg0: memref<8x128xi32, #tpu.memory_space<vmem>>, %arg1: memref<8x128xi32, #tpu.memory_space<vmem>>) attributes {dimension_semantics = [], scalar_prefetch = 0 : i64, scratch_operands = 0 : i64, tpu.core_type = #tpu.core_type<tc>} {
    %c0 = arith.constant 0 : index
    %c0_0 = arith.constant 0 : index
    %0 = vector.load %arg0[%c0, %c0_0] : memref<8x128xi32, #tpu.memory_space<vmem>>, vector<8x128xi32>
    %c1_i32 = arith.constant 1 : i32
    %1 = tpu.dynamic_rotate %0 by %c1_i32 dim 1 : vector<8x128xi32>, i32 -> vector<8x128xi32>
    %c0_1 = arith.constant 0 : index
    %c0_2 = arith.constant 0 : index
    %2 = vector.load %arg1[%c0_1, %c0_2] : memref<8x128xi32, #tpu.memory_space<vmem>>, vector<8x128xi32>
    tpu.vector_store %arg1[%c0_1, %c0_2], %1 {strides = array<i32>} : memref<8x128xi32, #tpu.memory_space<vmem>>, vector<8x128xi32>,
    return
  }
}

</mosaic_0001>

<bundles_post_ra>
// kernel: tpu_custom_call.1
= control target key start
LH: loop header
LB: loop body
LE: loop exit
PB: predicated region body
PF: predicated region fallthrough
CT: control target
= control target key end

     0   :  { %6 = vsyncpa [#allocation3], 0  ;;  %s128_s0 = inlined_call_operand.hbm [shape: s32[8,128], index: 0, kind: input, shape index: {}]   ;;  %s129_s1 = inlined_call_operand.hbm [shape: s32[8,128], index: 1, kind: output, shape index: {}]  }
   0x1   :  { %7 = vsyncpa [#allocation4], 0  ;;  %s91_s6 = smov [#allocation2]   ;;  %s43_s10 = scalar_lea.hbm %s128_s0, 128 }
   0x2   :  { %s14_s7 = sshll.u32 %s91_s6, 4  ;;  %p44_p0 = scmp.ne.s32.totalorder %s128_s0, %s43_s10  ;;  %s15_s7 = int_to_ptr.vmem [resolvable:$true] %s14_s7 }
   0x3   :  { %p47_p1 = scmp.lt.u32.totalorder %s43_s10, %s128_s0 }
   0x5   :  { %p49_p2 = pnand %p47_p1, %p44_p0 }
   0x7   :  { %52 = shalt.err (!%p49_p2)
}
   0x8   :  { %s53_s15 = scalar_lea.vmem %s15_s7, 128  ;;  %p58_p4 = scmp.lt.s32.totalorder %s15_s7, %s15_s7 }
   0x9   :  { %p54_p3 = scmp.ne.s32.totalorder %s15_s7, %s53_s15  ;;  %p59_p5 = scmp.lt.s32.totalorder %s53_s15, %s53_s15 }
   0xb   :  { %p60_p6 = por %p59_p5, %p58_p4 }
   0xd   :  { %p61_p7 = pnand %p60_p6, %p54_p3 }
   0xf   :  { %64 = shalt.err (!%p61_p7)
}
  0x10   :  { %17 = dma.hbm_to_vmem [thread:$0]  %s128_s0, 128, %s15_s7, [#allocation3]  }
  0x11   :  { %87 = dma.done.wait [#allocation3], 128  }
  0x12   :  { %88 = vsyncadd [#allocation3], 4294967168  ;;  %v21_v0 = vld [vmem:[#allocation2] sm:$0xff]  ;;  %s92_s18 = smov 1   ;;  %s93_s19 = smov [#allocation5]  }
  0x13   :  { %22 = vrot.lane.b32.xlu0 %v21_v0, %s92_s18  ;;  %s31_s20 = sshll.u32 %s93_s19, 4  ;;  %s32_s20 = int_to_ptr.vmem [resolvable:$true] %s31_s20 }
  0x14   :  { %s65_s21 = scalar_lea.vmem %s32_s20, 128  ;;  %p70_p9 = scmp.lt.s32.totalorder %s32_s20, %s32_s20 }
  0x15   :  { %p66_p8 = scmp.ne.s32.totalorder %s32_s20, %s65_s21  ;;  %p71_p10 = scmp.lt.s32.totalorder %s65_s21, %s65_s21 }
  0x17   :  { %p72_p11 = por %p71_p10, %p70_p9 }
  0x19   :  { %p73_p12 = pnand %p72_p11, %p66_p8 }
  0x85   :  { %v23_v1 = vpop.permute.xlu0 %22 }
  0x86   :  { %24 = vst [vmem:[#allocation5] sm:$0xff] %v23_v1 }
  0x87   :  { %76 = shalt.err (!%p73_p12)
}
  0x88   :  { %s77_s0 = scalar_lea.hbm %s129_s1, 128 }
  0x89   :  { %p78_p13 = scmp.ne.s32.totalorder %s129_s1, %s77_s0  ;;  %p81_p0 = scmp.lt.u32.totalorder %s77_s0, %s129_s1 }
  0x8b   :  { %p83_p1 = pnand %p81_p0, %p78_p13 }
  0x8d   :  { %86 = shalt.err (!%p83_p1)
}
  0x8e   :  { %34 = dma.vmem_to_hbm [thread:$0]  %s32_s20, 128, %s129_s1, [#allocation4]  }
  0x8f   :  { %89 = dma.done.wait [#allocation4], 128  }
  0x90   :  { %90 = vsyncadd [#allocation4], 4294967168 }
  0x91   :  { %38 = vsyncpa [#allocation3], 1 }
  0x92   :  { %39 = vsyncpa [#allocation4], 1 }

</bundles_post_ra>
